<compile_context>
chip_gen: v7x
topology: tpu7x:2x2x1
jax: 0.10.0
libtpu: 0.0.40
codegen_flags: <defaults>
</compile_context>

<pallas_src>
import functools

import jax
import jax.numpy as jnp
from jax.experimental import pallas as pl
from jax.experimental.pallas import tpu as pltpu


def _head_kernel(x_ref, w_ref, b_ref, scale_ref, shift_ref, o_ref):
    # x_ref:     (1, Cin, TP)   tile of pixels for one batch element
    # w_ref:     (Cout, Cin)    full 1x1-conv weight
    # b_ref:     (Cout, 1)      conv bias (broadcast along lanes)
    # scale_ref: (Cout, 1)      folded BN scale
    # shift_ref: (Cout, 1)      folded BN shift
    # o_ref:     (1, Cout, TP)
    acc = jnp.dot(w_ref[...], x_ref[0],
                  preferred_element_type=jnp.float32)        # (Cout, TP)
    acc = jnp.maximum(acc + b_ref[...], 0.0)                  # bias + ReLU
    # BN scale/shift kept separate (valid for any sign of gamma).
    o_ref[0] = (acc * scale_ref[...] + shift_ref[...]).astype(o_ref.dtype)


def _pick_tile(hw_pad, n_batch, max_tp=2048):
    """Largest multiple-of-128 pixel tile that divides hw_pad, capped by
    max_tp; keep >= 2 total grid steps when possible (v7x: 2 TensorCores)."""
    cands = [t for t in range(128, min(max_tp, hw_pad) + 1, 128)
             if hw_pad % t == 0]
    if not cands:
        return hw_pad
    tp = cands[-1]
    if n_batch * (hw_pad // tp) < 2:
        smaller = [t for t in cands if hw_pad // t >= 2]
        if smaller:
            tp = smaller[-1]
    return tp


def head_conv1x1_relu_bn(x_nchw, w, b, gamma, beta, running_mean, running_var,
                         eps=1e-5, max_tile_p=2048):
    """One head: Conv2d(1x1) -> ReLU -> BatchNorm2d (eval mode).

    x_nchw: (N, Cin, H, W) float32
    w:      (Cout, Cin)    conv weight (1x1 kernel squeezed)
    b:      (Cout,)        conv bias
    gamma, beta, running_mean, running_var: (Cout,)
    Returns (N, Cout, H, W).
    """
    n, cin, h, wdt = x_nchw.shape
    cout = w.shape[0]
    hw = h * wdt

    # NCHW -> (N, Cin, H*W): a pure reshape, no data movement.
    x3 = x_nchw.reshape(n, cin, hw)

    # Pad pixel axis up to a multiple of 128 so the lane axis is dense.
    hw_pad = ((hw + 127) // 128) * 128
    if hw_pad != hw:
        x3 = jnp.pad(x3, ((0, 0), (0, 0), (0, hw_pad - hw)))

    tp = _pick_tile(hw_pad, n, max_tile_p)

    # Fold BN into per-channel scale/shift, laid out (Cout, 1) so it
    # broadcasts along the lane (pixel) axis inside the kernel.
    scale = gamma / jnp.sqrt(running_var + eps)
    shift = beta - running_mean * scale
    b2 = b.reshape(cout, 1)
    scale2 = scale.reshape(cout, 1)
    shift2 = shift.reshape(cout, 1)

    # VMEM budget (double-buffered in/out tiles + resident params), with
    # headroom; explicit so larger tiles aren't blocked by scoped defaults
    # (v5e 16 MiB) and stay inside v7x's 64 MiB physical VMEM.
    tile_bytes = 2 * 2 * tp * (cin + cout) * 4 + cout * (cin + 3) * 4
    vmem_limit = int(min(max(4 * tile_bytes, 4 << 20), 32 << 20))

    out3 = pl.pallas_call(
        _head_kernel,
        out_shape=jax.ShapeDtypeStruct((n, cout, hw_pad), jnp.float32),
        grid_spec=pltpu.PrefetchScalarGridSpec(
            num_scalar_prefetch=0,
            grid=(n, hw_pad // tp),
            in_specs=[
                pl.BlockSpec((1, cin, tp), lambda i, j: (i, 0, j)),
                pl.BlockSpec((cout, cin), lambda i, j: (0, 0)),
                pl.BlockSpec((cout, 1), lambda i, j: (0, 0)),
                pl.BlockSpec((cout, 1), lambda i, j: (0, 0)),
                pl.BlockSpec((cout, 1), lambda i, j: (0, 0)),
            ],
            out_specs=pl.BlockSpec((1, cout, tp), lambda i, j: (i, 0, j)),
        ),
        compiler_params=pltpu.CompilerParams(
            dimension_semantics=("parallel", "parallel"),
            vmem_limit_bytes=vmem_limit),
    )(x3, w, b2, scale2, shift2)

    if hw_pad != hw:
        out3 = out3[:, :, :hw]
    # (N, Cout, H*W) -> (N, Cout, H, W): pure reshape.
    return out3.reshape(n, cout, h, wdt)


_head_jitted = jax.jit(head_conv1x1_relu_bn,
                       static_argnames=("eps", "max_tile_p"))


def make_params(key, in_channels, out_channels):
    """Deterministic parameter init for every head."""
    params = []
    for cin, cout in zip(in_channels, out_channels):
        key, k_w, k_b, k_g, k_be, k_m, k_v = jax.random.split(key, 7)
        params.append(dict(
            w=jax.random.normal(k_w, (cout, cin), jnp.float32) * 0.1,
            b=jax.random.normal(k_b, (cout,), jnp.float32) * 0.1,
            gamma=1.0 + 0.1 * jax.random.normal(k_g, (cout,), jnp.float32),
            beta=0.1 * jax.random.normal(k_be, (cout,), jnp.float32),
            running_mean=0.1 * jax.random.normal(k_m, (cout,), jnp.float32),
            running_var=jnp.abs(
                1.0 + 0.1 * jax.random.normal(k_v, (cout,), jnp.float32)),
        ))
    return params


def head_empty_mid_forward(xs, params):
    """Matches HeadEmptyMid.forward: list in, list out."""
    outs = []
    for x, p in zip(xs, params):
        outs.append(_head_jitted(
            x, p["w"], p["b"], p["gamma"], p["beta"],
            p["running_mean"], p["running_var"]))
    return outs


def _reference(xs, params, eps=1e-5):
    """Pure-JAX reference for correctness checking."""
    outs = []
    for x, p in zip(xs, params):
        y = jnp.einsum("nchw,oc->nohw", x, p["w"]) + p["b"][None, :, None, None]
        y = jnp.maximum(y, 0.0)
        scale = p["gamma"] / jnp.sqrt(p["running_var"] + eps)
        shift = p["beta"] - p["running_mean"] * scale
        y = y * scale[None, :, None, None] + shift[None, :, None, None]
        outs.append(y)
    return outs


if __name__ == "__main__":
    # Two heads, small shapes (PyTorch-style NCHW inputs).
    in_channels = [4, 8]
    out_channels = [8, 16]
    batch, spatial = 2, 16

    key = jax.random.PRNGKey(0)
    key, kx0, kx1 = jax.random.split(key, 3)
    xs = [
        jax.random.normal(kx0, (batch, in_channels[0], spatial, spatial),
                          jnp.float32),
        jax.random.normal(kx1, (batch, in_channels[1], spatial, spatial),
                          jnp.float32),
    ]
    params = make_params(key, in_channels, out_channels)

    outs = head_empty_mid_forward(xs, params)
    outs = [jax.block_until_ready(o) for o in outs]

    refs = _reference(xs, params)
    for o, r, cout in zip(outs, refs, out_channels):
        assert o.shape == (batch, cout, spatial, spatial), o.shape
        assert jnp.allclose(o, r, atol=1e-4, rtol=1e-4), \
            float(jnp.max(jnp.abs(o - r)))

    print("KERNEL_OK")
</pallas_src>

<mosaic_0001>
module attributes {stable_mosaic.version = 11 : i64} {
  func.func @_head_kernel(%arg0: i32, %arg1: i32, %arg2: memref<1x4x256xf32, #tpu.memory_space<vmem>>, %arg3: memref<8x4xf32, #tpu.memory_space<vmem>>, %arg4: memref<8x1xf32, #tpu.memory_space<vmem>>, %arg5: memref<8x1xf32, #tpu.memory_space<vmem>>, %arg6: memref<8x1xf32, #tpu.memory_space<vmem>>, %arg7: memref<1x8x256xf32, #tpu.memory_space<vmem>>) attributes {dimension_semantics = [#tpu.dimension_semantics<parallel>, #tpu.dimension_semantics<parallel>], iteration_bounds = array<i64: 2, 1>, scalar_prefetch = 0 : i64, scratch_operands = 0 : i64, tpu.core_type = #tpu.core_type<tc>, window_params = [{transform_indices = @transform_0, window_bounds = array<i64: 1, 4, 256>}, {pipeline_mode = #tpu.pipeline_mode<synchronous>, transform_indices = @transform_1, window_bounds = array<i64: 8, 4>}, {pipeline_mode = #tpu.pipeline_mode<synchronous>, transform_indices = @transform_2, window_bounds = array<i64: 8, 1>}, {pipeline_mode = #tpu.pipeline_mode<synchronous>, transform_indices = @transform_3, window_bounds = array<i64: 8, 1>}, {pipeline_mode = #tpu.pipeline_mode<synchronous>, transform_indices = @transform_4, window_bounds = array<i64: 8, 1>}, {transform_indices = @transform_5, window_bounds = array<i64: 1, 8, 256>}]} {
    %c0 = arith.constant 0 : index
    %c0_0 = arith.constant 0 : index
    %0 = vector.load %arg3[%c0, %c0_0] : memref<8x4xf32, #tpu.memory_space<vmem>>, vector<8x4xf32>
    %c0_1 = arith.constant 0 : index
    %c0_2 = arith.constant 0 : index
    %c0_3 = arith.constant 0 : index
    %1 = vector.load %arg2[%c0_1, %c0_2, %c0_3] : memref<1x4x256xf32, #tpu.memory_space<vmem>>, vector<1x4x256xf32>
    %2 = vector.shape_cast %1 : vector<1x4x256xf32> to vector<4x256xf32>
    %cst = arith.constant dense<0.000000e+00> : vector<8x256xf32>
    %3 = tpu.matmul %0, %2, %cst {dimension_numbers = #tpu.dot_dimension_numbers<[1], [0], [0], [1], [0, 0, 1, 1], [], []>} : vector<8x4xf32>, vector<4x256xf32>, vector<8x256xf32> -> vector<8x256xf32>
    %c0_4 = arith.constant 0 : index
    %c0_5 = arith.constant 0 : index
    %4 = vector.load %arg4[%c0_4, %c0_5] : memref<8x1xf32, #tpu.memory_space<vmem>>, vector<8x1xf32>
    %5 = vector.broadcast %4 : vector<8x1xf32> to vector<8x256xf32>
    %6 = arith.addf %3, %5 : vector<8x256xf32>
    %cst_6 = arith.constant 0.000000e+00 : f32
    %7 = vector.broadcast %cst_6 : f32 to vector<8x256xf32>
    %8 = arith.maximumf %6, %7 : vector<8x256xf32>
    %c0_7 = arith.constant 0 : index
    %c0_8 = arith.constant 0 : index
    %9 = vector.load %arg5[%c0_7, %c0_8] : memref<8x1xf32, #tpu.memory_space<vmem>>, vector<8x1xf32>
    %10 = vector.broadcast %9 : vector<8x1xf32> to vector<8x256xf32>
    %11 = arith.mulf %8, %10 : vector<8x256xf32>
    %c0_9 = arith.constant 0 : index
    %c0_10 = arith.constant 0 : index
    %12 = vector.load %arg6[%c0_9, %c0_10] : memref<8x1xf32, #tpu.memory_space<vmem>>, vector<8x1xf32>
    %13 = vector.broadcast %12 : vector<8x1xf32> to vector<8x256xf32>
    %14 = arith.addf %11, %13 : vector<8x256xf32>
    %c0_11 = arith.constant 0 : index
    %c0_12 = arith.constant 0 : index
    %c0_13 = arith.constant 0 : index
    %15 = vector.load %arg7[%c0_11, %c0_12, %c0_13] : memref<1x8x256xf32, #tpu.memory_space<vmem>>, vector<1x8x256xf32>
    %16 = vector.shape_cast %15 : vector<1x8x256xf32> to vector<8x256xf32>
    %17 = vector.shape_cast %14 : vector<8x256xf32> to vector<1x8x256xf32>
    tpu.vector_store %arg7[%c0_11, %c0_12, %c0_13], %17 {strides = array<i32>} : memref<1x8x256xf32, #tpu.memory_space<vmem>>, vector<1x8x256xf32>,
    return
  }
  func.func @transform_0(%arg0: i32, %arg1: i32) -> (i32, i32, i32) {
    %c0_i32 = arith.constant 0 : i32
    %c0_i32_0 = arith.constant 0 : i32
    return %arg0, %c0_i32, %arg1 : i32, i32, i32
  }
  func.func @transform_1(%arg0: i32, %arg1: i32) -> (i32, i32) {
    %c0_i32 = arith.constant 0 : i32
    %c0_i32_0 = arith.constant 0 : i32
    %c0_i32_1 = arith.constant 0 : i32
    return %c0_i32, %c0_i32_0 : i32, i32
  }
  func.func @transform_2(%arg0: i32, %arg1: i32) -> (i32, i32) {
    %c0_i32 = arith.constant 0 : i32
    %c0_i32_0 = arith.constant 0 : i32
    %c0_i32_1 = arith.constant 0 : i32
    return %c0_i32, %c0_i32_0 : i32, i32
  }
  func.func @transform_3(%arg0: i32, %arg1: i32) -> (i32, i32) {
    %c0_i32 = arith.constant 0 : i32
    %c0_i32_0 = arith.constant 0 : i32
    %c0_i32_1 = arith.constant 0 : i32
    return %c0_i32, %c0_i32_0 : i32, i32
  }
  func.func @transform_4(%arg0: i32, %arg1: i32) -> (i32, i32) {
    %c0_i32 = arith.constant 0 : i32
    %c0_i32_0 = arith.constant 0 : i32
    %c0_i32_1 = arith.constant 0 : i32
    return %c0_i32, %c0_i32_0 : i32, i32
  }
  func.func @transform_5(%arg0: i32, %arg1: i32) -> (i32, i32, i32) {
    %c0_i32 = arith.constant 0 : i32
    %c0_i32_0 = arith.constant 0 : i32
    return %arg0, %c0_i32, %arg1 : i32, i32, i32
  }
}

</mosaic_0001>

<bundles_post_ra>
// kernel: head_conv1x1_relu_bn.1
= control target key start
LH: loop header
LB: loop body
LE: loop exit
PB: predicated region body
PF: predicated region fallthrough
CT: control target
= control target key end

     0   :  { %s562_s18 = smov 0   ;;  %s564_s19 = smov 0   ;;  %s607_s0 = inlined_call_operand.vmem [shape: f32[2,4,256], index: 0, kind: input, shape index: {}]   ;;  %s608_s1 = inlined_call_operand.vmem [shape: f32[8,4], index: 1, kind: input, shape index: {}]   ;;  %s609_s2 = inlined_call_operand.vmem [shape: f32[8,1], index: 2, kind: input, shape index: {}]   ;;  %s610_s3 = inlined_call_operand.vmem [shape: f32[8,1], index: 3, kind: input, shape index: {}]   ;;  %s611_s4 = inlined_call_operand.vmem [shape: f32[8,1], index: 4, kind: input, shape index: {}]   ;;  %s612_s5 = inlined_call_operand.vmem [shape: f32[2,8,256], index: 5, kind: output, shape index: {}]  }
   0x1   :  { %s566_s20 = smov 0  }
   0x2 LB: > { %s27_s21 = sadd.s32 1, %s524_s19  ;;  %p465_p0 = scmp.ge.s32.totalorder %s528_s20, 1  ;;  %s528_s20 = sphi %s566_s20, %s15_s20   ;;  %s524_s19 = sphi %s564_s19, %s614_s19   ;;  %s520_s18 = sphi %s562_s18, %s613_s18  }
   0x3   : > { %p29_p1 = scmp.ge.s32.totalorder %s27_s21, 2  ;;  %p208_p2 = scmp.lt.s32.totalorder %s528_s20, 3 }
   0x5   : > { %s616_s21 = smov (%p29_p1, %s27_s21), 0  ;;  %p209_p3 = pnand %p465_p0, %p208_p2 }
   0x6   : > { %p245_p4 = scmp.lt.s32.totalorder (!%p209_p3), %s520_s18, 1  ;;  %v530_v0 = vmov (!%p209_p3), 0.0   ;;  %v531_v1 = vmov (!%p209_p3), 0   ;;  %v266_v2 = vld [vmem:[%s609_s2] sm:$0xff] (!%p209_p3)  ;;  %vm278_vm0 = vcmask (!%p209_p3), 1043456   ;;  %vm274_vm1 = vcmask (!%p209_p3), 31744  }
   0x7   : > { %212 = sbr.rel (%p209_p3) target bundleno = 244 (0xf4), region = 40  ;;  %347 = vmatprep.mubr.f32.mxu0 (!%p209_p3), %v530_v0  ;;  %503 = vset.pattern.permute.xlu0 (!%p209_p3), %v531_v1  ;;  %v364_v3 = vld [vmem:[%s611_s4] sm:$0xff] (!%p209_p3) }
   0x8   : > { %269 = vperm.xlu0 (!%p209_p3), %503, %v266_v2   ;;  %504 = vset.pattern.permute.xlu1 (!%p209_p3), %v531_v1  ;;  %v356_v4 = vld [vmem:[%s610_s3] sm:$0xff] (!%p209_p3) }
   0x9   : > { %367 = vperm.xlu1 (!%p209_p3), %504, %v364_v3   ;;  %v264_v7 = vld [vmem:[%s608_s1] sm:$0xff] (!%p209_p3) }
   0xc   : > { %359 = vperm.xlu0 (!%p209_p3), %503, %v356_v4  }
   0xe   : > { %s618_s18 = smov (!%p245_p4, %s520_s18), 1 }
   0xf   : > { %s475_s28 = sshll.u32 %s618_s18, 3  ;;  %s476_s9 = sshll.u32 %s618_s18, 4 }
  0x10   : > { %s252_s6 = scalar_lea.vmem %s607_s0, %s475_s28  ;;  %s262_s12 = scalar_lea.vmem %s612_s5, %s476_s9 }
  0x11   : > { %v265_v5 = vld [vmem:[%s252_s6] sm:$0xff] }
  0x12   : > { %v273_v6 = vcombine.high %v265_v5, %v265_v5 }
  0x14   : > { %470 = vmatprep.subr.msk.mxu0 %vm278_vm0, %v273_v6 }
  0x15   : > { %471 = vmatpush1.msk.msra.mxu0 %vm278_vm0, %v265_v5 }
  0x16   : > { %472 = vmatmul.mubr.msk.f32.vlgmr.msra.gmra.mrb[0].mxu0 %vm274_vm1, %v264_v7 }
  0x87   : > { %v270_v8 = vpop.permute.xlu0 %269 }
  0x88   : > { %v368_v16 = vpop.permute.xlu1 %367 }
  0x8b   : > { %v360_v14 = vpop.permute.xlu0 %359 }
  0xe9   : > { %v349_v9 = vpop.f32.mrb[0].mxu0 }
  0xea   : > { %v350_v10 = vadd.f32 %v349_v9, %v270_v8  ;;  %v351_v11 = vpop.f32.mrb[1].mxu0 }
  0xeb   : > { %v352_v12 = vadd.f32 %v351_v11, %v270_v8 }
  0xec   : > { %v354_v13 = vmax.f32 %v350_v10, 0.0 }
  0xed   : > { %v355_v15 = vmax.f32 %v352_v12, 0.0 }
  0xee   : > { %v362_v17 = vmul.f32 %v360_v14, %v354_v13 }
  0xef   : > { %v363_v18 = vmul.f32 %v360_v14, %v355_v15 }
  0xf0   : > { %v370_v19 = vadd.f32 %v368_v16, %v362_v17 }
  0xf1   : > { %v371_v20 = vadd.f32 %v368_v16, %v363_v18 }
  0xf2   : > { %372 = vst [vmem:[%s262_s12] sm:$0xff] %v370_v19 }
  0xf3   : > { %373 = vst [vmem:[%s262_s12 + $0x8] sm:$0xff] %v371_v20 }
  0xf4 PF: > { %s15_s20 = sadd.s32 1, %s528_s20   ;;  %s613_s18 = smov %s524_s19 }
  0xf5   : > { %p12_p5 = scmp.ge.s32.totalorder %s15_s20, 4   ;;  %s614_s19 = smov %s616_s21 }
  0xf7   :  { %14 = sbr.rel (!%p12_p5) target bundleno = 2 (0x2), region = 70 }

</bundles_post_ra>
